<compile_context>
chip_gen: v7x
topology: tpu7x:2x2x1
jax: 0.10.0
libtpu: 0.0.40
codegen_flags: <defaults>
</compile_context>

<pallas_src>
import functools

import jax
import jax.numpy as jnp
from jax.experimental import pallas as pl
from jax.experimental.pallas import tpu as pltpu


def _supcon_tiled_kernel(lab_row_ref, lab_col_ref, q_ref, kt_ref, loss_ref,
                         m_scr, l_scr, s_scr, c_scr, *,
                         temperature: float, base_temperature: float):
    # lab_row_ref: [TM, 1] int32 labels of the anchor rows in this row block
    # lab_col_ref: [1, TN] int32 labels of the contrast columns in this col block
    # q_ref:       [TM, D] anchor features, pre-scaled by 1/temperature
    # kt_ref:      [D, TN] contrast features, pre-transposed (MXU-friendly RHS)
    # loss_ref:    [TM, 1] f32 per-anchor loss (written on the last col block only)
    # scratch:     m = running row max (incl. self-sim, matching PyTorch),
    #              l = running sum exp(sim - m) excluding self,
    #              s = running sum of mask*sim, c = running positive-pair count
    i = pl.program_id(0)
    j = pl.program_id(1)
    tm = q_ref.shape[0]
    tn = kt_ref.shape[1]

    @pl.when(j == 0)
    def _init():
        m_scr[...] = jnp.full_like(m_scr, -jnp.inf)
        l_scr[...] = jnp.zeros_like(l_scr)
        s_scr[...] = jnp.zeros_like(s_scr)
        c_scr[...] = jnp.zeros_like(c_scr)

    # MXU: [TM,D] @ [D,TN] -> f32 accumulate. 1/temperature already folded into q.
    sim = jnp.dot(q_ref[...], kt_ref[...], preferred_element_type=jnp.float32)
    pos = lab_row_ref[...] == lab_col_ref[...]           # [TM,TN] bool positive mask

    def _accumulate(keep):
        # keep: None for tiles that do not touch the diagonal, otherwise a bool
        # [TM,TN] that is False exactly on the self-contrast entries.
        m_prev = m_scr[...]
        m_new = jnp.maximum(m_prev, jnp.max(sim, axis=1, keepdims=True))
        e = jnp.exp(sim - m_new)
        p = pos
        if keep is not None:
            e = jnp.where(keep, e, 0.0)
            p = jnp.logical_and(p, keep)
        # Online rescale of the running exp-sum when the row max updates.
        l_scr[...] = l_scr[...] * jnp.exp(m_prev - m_new) + jnp.sum(e, axis=1, keepdims=True)
        # sum(mask*sim) is linear in sim -> no rescaling needed.
        s_scr[...] = s_scr[...] + jnp.sum(jnp.where(p, sim, 0.0), axis=1, keepdims=True)
        c_scr[...] = c_scr[...] + jnp.sum(p.astype(jnp.float32), axis=1, keepdims=True)
        m_scr[...] = m_new

    row0 = i * tm
    col0 = j * tn
    # Does this tile intersect the global diagonal?
    hits_diag = jnp.logical_and(row0 < col0 + tn, col0 < row0 + tm)

    @pl.when(hits_diag)
    def _diag_tile():
        r = row0 + jax.lax.broadcasted_iota(jnp.int32, (tm, tn), 0)
        c = col0 + jax.lax.broadcasted_iota(jnp.int32, (tm, tn), 1)
        _accumulate(keep=(r != c))

    @pl.when(jnp.logical_not(hits_diag))
    def _offdiag_tile():
        _accumulate(keep=None)

    @pl.when(j == pl.num_programs(1) - 1)
    def _finalize():
        # sum_j mask*log_prob = sum_j mask*sim - count * logsumexp(row, excl. self)
        lse = m_scr[...] + jnp.log(l_scr[...])
        cnt = c_scr[...]
        safe_cnt = jnp.where(cnt < 1e-6, 1.0, cnt)
        mean_lpp = (s_scr[...] - cnt * lse) * pl.reciprocal(safe_cnt, approx=True)
        loss_ref[...] = (-(temperature / base_temperature) * mean_lpp).astype(loss_ref.dtype)


def _pick_tile(n, candidates):
    for t in candidates:
        if n % t == 0:
            return t
    return n  # full-dimension block (always legal; only sensible for small n)


def supcon_loss(features, labels=None, mask=None, *, temperature=0.02,
                contrast_mode='all', base_temperature=0.07,
                compute_dtype=jnp.bfloat16, block_m=None, block_n=None):
    """features: [bsz, n_views, D]; labels: [bsz] int. Returns scalar loss.

    compute_dtype: dtype fed to the MXU (bf16 default, f32 accumulation). Features
    are expected to be L2-normalized (as in SupCon), so bf16 inputs are safe.
    """
    if contrast_mode != 'all':
        # TODO(synk): contrast_mode='one' path not implemented (default path is 'all').
        raise NotImplementedError("only contrast_mode='all' is implemented")
    if labels is None or mask is not None:
        # TODO(synk): SimCLR fallback (labels=None -> mask=eye) and explicit `mask`
        # argument are not implemented; only the labeled SupCon path is.
        raise NotImplementedError("only the labeled (SupCon) path is implemented")

    bsz, n_views, d = features.shape
    n = bsz * n_views

    # torch.cat(torch.unbind(features, dim=1), dim=0) -> view-major flatten.
    contrast = jnp.transpose(features, (1, 0, 2)).reshape(n, d).astype(jnp.float32)
    # Fold 1/temperature into the anchor operand (N*D instead of N^2 scaling work).
    q = (contrast * (1.0 / float(temperature))).astype(compute_dtype)   # [N, D]
    kt = contrast.T.astype(compute_dtype)                               # [D, N]

    # Labels tiled so row r of the repeated mask corresponds to labels[r % bsz].
    labels_rep = jnp.tile(labels.reshape(-1).astype(jnp.int32), (n_views,))  # [N]
    lab_row = labels_rep.reshape(n, 1)
    lab_col = labels_rep.reshape(1, n)

    tm = block_m if block_m is not None else _pick_tile(n, (256, 128, 8))
    tn = block_n if block_n is not None else _pick_tile(n, (512, 256, 128))
    assert n % tm == 0 and n % tn == 0
    grid = (n // tm, n // tn)

    kernel = functools.partial(_supcon_tiled_kernel,
                               temperature=float(temperature),
                               base_temperature=float(base_temperature))

    per_row_loss = pl.pallas_call(
        kernel,
        out_shape=jax.ShapeDtypeStruct((n, 1), jnp.float32),
        grid_spec=pltpu.PrefetchScalarGridSpec(
            num_scalar_prefetch=0,
            grid=grid,
            in_specs=[
                pl.BlockSpec((tm, 1), lambda i, j: (i, 0)),   # anchor-row labels
                pl.BlockSpec((1, tn), lambda i, j: (0, j)),   # contrast-col labels
                pl.BlockSpec((tm, d), lambda i, j: (i, 0)),   # q tile [TM,D]
                pl.BlockSpec((d, tn), lambda i, j: (0, j)),   # kT tile [D,TN]
            ],
            out_specs=pl.BlockSpec((tm, 1), lambda i, j: (i, 0)),
            scratch_shapes=[pltpu.VMEM((tm, 1), jnp.float32)] * 4,
        ),
        compiler_params=pltpu.CompilerParams(
            dimension_semantics=("parallel", "arbitrary"),
            vmem_limit_bytes=32 * 1024 * 1024,
        ),
    )(lab_row, lab_col, q, kt)

    # loss.view(anchor_count, batch_size).mean() == mean over all N anchors.
    return jnp.mean(per_row_loss)


def _supcon_loss_ref(features, labels, *, temperature=0.02, base_temperature=0.07):
    """Pure-JAX f32 reference mirroring the PyTorch forward (contrast_mode='all')."""
    bsz, n_views, d = features.shape
    n = bsz * n_views
    feat = jnp.transpose(features, (1, 0, 2)).reshape(n, d).astype(jnp.float32)
    lab = jnp.tile(labels.reshape(-1), (n_views,))
    mask = (lab[:, None] == lab[None, :]).astype(jnp.float32)
    sim = feat @ feat.T / temperature
    logits = sim - jnp.max(sim, axis=1, keepdims=True)
    logits_mask = 1.0 - jnp.eye(n, dtype=jnp.float32)
    mask = mask * logits_mask
    exp_logits = jnp.exp(logits) * logits_mask
    log_prob = logits - jnp.log(jnp.sum(exp_logits, axis=1, keepdims=True))
    mpp = jnp.sum(mask, axis=1)
    mpp = jnp.where(mpp < 1e-6, 1.0, mpp)
    mean_lpp = jnp.sum(mask * log_prob, axis=1) / mpp
    loss = -(temperature / base_temperature) * mean_lpp
    return jnp.mean(loss)


if __name__ == "__main__":
    key = jax.random.PRNGKey(0)

    # Case A: small shape, single-column-block grid.
    bsz, n_views, d = 8, 2, 32
    kf, kl, key = jax.random.split(key, 3)
    features = jax.random.normal(kf, (bsz, n_views, d), dtype=jnp.float32)
    features = features / jnp.linalg.norm(features, axis=-1, keepdims=True)
    labels = jax.random.randint(kl, (bsz,), 0, 4, dtype=jnp.int32)

    ref = _supcon_loss_ref(features, labels, temperature=0.02, base_temperature=0.07)
    loss_f32 = jax.block_until_ready(
        supcon_loss(features, labels, temperature=0.02, base_temperature=0.07,
                    compute_dtype=jnp.float32))
    assert jnp.allclose(loss_f32, ref, rtol=1e-2, atol=1e-2), (loss_f32, ref)
    loss_bf16 = jax.block_until_ready(
        supcon_loss(features, labels, temperature=0.02, base_temperature=0.07,
                    compute_dtype=jnp.bfloat16))
    assert jnp.allclose(loss_bf16, ref, rtol=5e-2, atol=5e-2), (loss_bf16, ref)

    # Case B: forces a multi-tile (2x2) grid -> exercises online LSE across col
    # blocks, diagonal vs off-diagonal tile paths, and init/finalize phases.
    bsz2, n_views2, d2 = 128, 2, 32
    kf2, kl2 = jax.random.split(key)
    features2 = jax.random.normal(kf2, (bsz2, n_views2, d2), dtype=jnp.float32)
    features2 = features2 / jnp.linalg.norm(features2, axis=-1, keepdims=True)
    labels2 = jax.random.randint(kl2, (bsz2,), 0, 4, dtype=jnp.int32)

    ref2 = _supcon_loss_ref(features2, labels2, temperature=0.02, base_temperature=0.07)
    loss2_f32 = jax.block_until_ready(
        supcon_loss(features2, labels2, temperature=0.02, base_temperature=0.07,
                    compute_dtype=jnp.float32, block_m=128, block_n=128))
    assert jnp.allclose(loss2_f32, ref2, rtol=1e-2, atol=1e-2), (loss2_f32, ref2)
    loss2_bf16 = jax.block_until_ready(
        supcon_loss(features2, labels2, temperature=0.02, base_temperature=0.07,
                    compute_dtype=jnp.bfloat16, block_m=128, block_n=128))
    assert jnp.allclose(loss2_bf16, ref2, rtol=5e-2, atol=5e-2), (loss2_bf16, ref2)

    print("KERNEL_OK")
</pallas_src>

<mosaic_0001>
module attributes {stable_mosaic.version = 11 : i64} {
  func.func @_supcon_tiled_kernel(%arg0: i32, %arg1: i32, %arg2: memref<8x1xi32, #tpu.memory_space<vmem>>, %arg3: memref<1x16xi32, #tpu.memory_space<vmem>>, %arg4: memref<8x32xf32, #tpu.memory_space<vmem>>, %arg5: memref<32x16xf32, #tpu.memory_space<vmem>>, %arg6: memref<8x1xf32, #tpu.memory_space<vmem>>, %arg7: memref<8x1xf32, #tpu.memory_space<vmem>>, %arg8: memref<8x1xf32, #tpu.memory_space<vmem>>, %arg9: memref<8x1xf32, #tpu.memory_space<vmem>>, %arg10: memref<8x1xf32, #tpu.memory_space<vmem>>) attributes {dimension_semantics = [#tpu.dimension_semantics<parallel>, #tpu.dimension_semantics<arbitrary>], iteration_bounds = array<i64: 2, 1>, scalar_prefetch = 0 : i64, scratch_operands = 4 : i64, tpu.core_type = #tpu.core_type<tc>, window_params = [{transform_indices = @transform_0, window_bounds = array<i64: 8, 1>}, {transform_indices = @transform_1, window_bounds = array<i64: 1, 16>}, {transform_indices = @transform_2, window_bounds = array<i64: 8, 32>}, {transform_indices = @transform_3, window_bounds = array<i64: 32, 16>}, {transform_indices = @transform_4, window_bounds = array<i64: 8, 1>}]} {
    %c0_i32 = arith.constant 0 : i32
    %0 = arith.cmpi eq, %arg1, %c0_i32 : i32
    %1 = arith.extui %0 : i1 to i32
    %c0_i32_0 = arith.constant 0 : i32
    %2 = arith.cmpi ne, %1, %c0_i32_0 : i32
    scf.if %2 {
      %cst_14 = arith.constant 0xFF800000 : f32
      %26 = vector.broadcast %cst_14 : f32 to vector<8x1xf32>
      %c0_15 = arith.constant 0 : index
      %c0_16 = arith.constant 0 : index
      %27 = vector.load %arg7[%c0_15, %c0_16] : memref<8x1xf32, #tpu.memory_space<vmem>>, vector<8x1xf32>
      tpu.vector_store %arg7[%c0_15, %c0_16], %26 {strides = array<i32>} : memref<8x1xf32, #tpu.memory_space<vmem>>, vector<8x1xf32>,
      %cst_17 = arith.constant 0.000000e+00 : f32
      %28 = vector.broadcast %cst_17 : f32 to vector<8x1xf32>
      %c0_18 = arith.constant 0 : index
      %c0_19 = arith.constant 0 : index
      %29 = vector.load %arg8[%c0_18, %c0_19] : memref<8x1xf32, #tpu.memory_space<vmem>>, vector<8x1xf32>
      tpu.vector_store %arg8[%c0_18, %c0_19], %28 {strides = array<i32>} : memref<8x1xf32, #tpu.memory_space<vmem>>, vector<8x1xf32>,
      %cst_20 = arith.constant 0.000000e+00 : f32
      %30 = vector.broadcast %cst_20 : f32 to vector<8x1xf32>
      %c0_21 = arith.constant 0 : index
      %c0_22 = arith.constant 0 : index
      %31 = vector.load %arg9[%c0_21, %c0_22] : memref<8x1xf32, #tpu.memory_space<vmem>>, vector<8x1xf32>
      tpu.vector_store %arg9[%c0_21, %c0_22], %30 {strides = array<i32>} : memref<8x1xf32, #tpu.memory_space<vmem>>, vector<8x1xf32>,
      %cst_23 = arith.constant 0.000000e+00 : f32
      %32 = vector.broadcast %cst_23 : f32 to vector<8x1xf32>
      %c0_24 = arith.constant 0 : index
      %c0_25 = arith.constant 0 : index
      %33 = vector.load %arg10[%c0_24, %c0_25] : memref<8x1xf32, #tpu.memory_space<vmem>>, vector<8x1xf32>
      tpu.vector_store %arg10[%c0_24, %c0_25], %32 {strides = array<i32>} : memref<8x1xf32, #tpu.memory_space<vmem>>, vector<8x1xf32>,
    } else {
    }
    %c0 = arith.constant 0 : index
    %c0_1 = arith.constant 0 : index
    %3 = vector.load %arg4[%c0, %c0_1] : memref<8x32xf32, #tpu.memory_space<vmem>>, vector<8x32xf32>
    %c0_2 = arith.constant 0 : index
    %c0_3 = arith.constant 0 : index
    %4 = vector.load %arg5[%c0_2, %c0_3] : memref<32x16xf32, #tpu.memory_space<vmem>>, vector<32x16xf32>
    %cst = arith.constant dense<0.000000e+00> : vector<8x16xf32>
    %5 = tpu.matmul %3, %4, %cst {dimension_numbers = #tpu.dot_dimension_numbers<[1], [0], [0], [1], [0, 0, 1, 1], [], []>} : vector<8x32xf32>, vector<32x16xf32>, vector<8x16xf32> -> vector<8x16xf32>
    %c0_4 = arith.constant 0 : index
    %c0_5 = arith.constant 0 : index
    %6 = vector.load %arg2[%c0_4, %c0_5] : memref<8x1xi32, #tpu.memory_space<vmem>>, vector<8x1xi32>
    %c0_6 = arith.constant 0 : index
    %c0_7 = arith.constant 0 : index
    %7 = vector.load %arg3[%c0_6, %c0_7] : memref<1x16xi32, #tpu.memory_space<vmem>>, vector<1x16xi32>
    %8 = vector.broadcast %6 : vector<8x1xi32> to vector<8x16xi32>
    %9 = vector.broadcast %7 : vector<1x16xi32> to vector<8x16xi32>
    %10 = arith.cmpi eq, %8, %9 : vector<8x16xi32>
    %c8_i32 = arith.constant 8 : i32
    %11 = arith.muli %arg0, %c8_i32 : i32
    %c16_i32 = arith.constant 16 : i32
    %12 = arith.muli %arg1, %c16_i32 : i32
    %c16_i32_8 = arith.constant 16 : i32
    %13 = arith.addi %12, %c16_i32_8 : i32
    %14 = arith.cmpi slt, %11, %13 : i32
    %c8_i32_9 = arith.constant 8 : i32
    %15 = arith.addi %11, %c8_i32_9 : i32
    %16 = arith.cmpi slt, %12, %15 : i32
    %17 = arith.andi %14, %16 : i1
    %18 = arith.extui %17 : i1 to i32
    %c0_i32_10 = arith.constant 0 : i32
    %19 = arith.cmpi ne, %18, %c0_i32_10 : i32
    scf.if %19 {
      %26 = tpu.iota {dimensions = array<i32: 0>} : vector<8x16xi32>
      %27 = vector.broadcast %11 : i32 to vector<8x16xi32>
      %28 = arith.addi %27, %26 : vector<8x16xi32>
      %29 = tpu.iota {dimensions = array<i32: 1>} : vector<8x16xi32>
      %30 = vector.broadcast %12 : i32 to vector<8x16xi32>
      %31 = arith.addi %30, %29 : vector<8x16xi32>
      %32 = arith.cmpi ne, %28, %31 : vector<8x16xi32>
      %c0_14 = arith.constant 0 : index
      %c0_15 = arith.constant 0 : index
      %33 = vector.load %arg7[%c0_14, %c0_15] : memref<8x1xf32, #tpu.memory_space<vmem>>, vector<8x1xf32>
      %cst_16 = arith.constant dense<0xFF800000> : vector<8xf32>
      %34 = vector.multi_reduction <maximumf>, %5, %cst_16 [1] : vector<8x16xf32> to vector<8xf32>
      %35 = vector.shape_cast %34 : vector<8xf32> to vector<8x1xf32>
      %36 = arith.maximumf %33, %35 : vector<8x1xf32>
      %37 = vector.broadcast %36 : vector<8x1xf32> to vector<8x16xf32>
      %38 = arith.subf %5, %37 : vector<8x16xf32>
      %39 = math.exp %38 : vector<8x16xf32>
      %cst_17 = arith.constant 0.000000e+00 : f32
      %40 = vector.broadcast %cst_17 : f32 to vector<8x16xf32>
      %41 = arith.select %32, %39, %40 : vector<8x16xi1>, vector<8x16xf32>
      %42 = arith.andi %10, %32 : vector<8x16xi1>
      %c0_18 = arith.constant 0 : index
      %c0_19 = arith.constant 0 : index
      %43 = vector.load %arg8[%c0_18, %c0_19] : memref<8x1xf32, #tpu.memory_space<vmem>>, vector<8x1xf32>
      %44 = arith.subf %33, %36 : vector<8x1xf32>
      %45 = math.exp %44 : vector<8x1xf32>
      %46 = arith.mulf %43, %45 : vector<8x1xf32>
      %cst_20 = arith.constant dense<0.000000e+00> : vector<8xf32>
      %47 = vector.multi_reduction <add>, %41, %cst_20 [1] : vector<8x16xf32> to vector<8xf32>
      %48 = vector.shape_cast %47 : vector<8xf32> to vector<8x1xf32>
      %49 = arith.addf %46, %48 : vector<8x1xf32>
      %c0_21 = arith.constant 0 : index
      %c0_22 = arith.constant 0 : index
      %50 = vector.load %arg8[%c0_21, %c0_22] : memref<8x1xf32, #tpu.memory_space<vmem>>, vector<8x1xf32>
      tpu.vector_store %arg8[%c0_21, %c0_22], %49 {strides = array<i32>} : memref<8x1xf32, #tpu.memory_space<vmem>>, vector<8x1xf32>,
      %c0_23 = arith.constant 0 : index
      %c0_24 = arith.constant 0 : index
      %51 = vector.load %arg9[%c0_23, %c0_24] : memref<8x1xf32, #tpu.memory_space<vmem>>, vector<8x1xf32>
      %cst_25 = arith.constant 0.000000e+00 : f32
      %52 = vector.broadcast %cst_25 : f32 to vector<8x16xf32>
      %53 = arith.select %42, %5, %52 : vector<8x16xi1>, vector<8x16xf32>
      %cst_26 = arith.constant dense<0.000000e+00> : vector<8xf32>
      %54 = vector.multi_reduction <add>, %53, %cst_26 [1] : vector<8x16xf32> to vector<8xf32>
      %55 = vector.shape_cast %54 : vector<8xf32> to vector<8x1xf32>
      %56 = arith.addf %51, %55 : vector<8x1xf32>
      %c0_27 = arith.constant 0 : index
      %c0_28 = arith.constant 0 : index
      %57 = vector.load %arg9[%c0_27, %c0_28] : memref<8x1xf32, #tpu.memory_space<vmem>>, vector<8x1xf32>
      tpu.vector_store %arg9[%c0_27, %c0_28], %56 {strides = array<i32>} : memref<8x1xf32, #tpu.memory_space<vmem>>, vector<8x1xf32>,
      %c0_29 = arith.constant 0 : index
      %c0_30 = arith.constant 0 : index
      %58 = vector.load %arg10[%c0_29, %c0_30] : memref<8x1xf32, #tpu.memory_space<vmem>>, vector<8x1xf32>
      %59 = arith.extui %42 : vector<8x16xi1> to vector<8x16xi32>
      %60 = arith.sitofp %59 : vector<8x16xi32> to vector<8x16xf32>
      %cst_31 = arith.constant dense<0.000000e+00> : vector<8xf32>
      %61 = vector.multi_reduction <add>, %60, %cst_31 [1] : vector<8x16xf32> to vector<8xf32>
      %62 = vector.shape_cast %61 : vector<8xf32> to vector<8x1xf32>
      %63 = arith.addf %58, %62 : vector<8x1xf32>
      %c0_32 = arith.constant 0 : index
      %c0_33 = arith.constant 0 : index
      %64 = vector.load %arg10[%c0_32, %c0_33] : memref<8x1xf32, #tpu.memory_space<vmem>>, vector<8x1xf32>
      tpu.vector_store %arg10[%c0_32, %c0_33], %63 {strides = array<i32>} : memref<8x1xf32, #tpu.memory_space<vmem>>, vector<8x1xf32>,
      %c0_34 = arith.constant 0 : index
      %c0_35 = arith.constant 0 : index
      %65 = vector.load %arg7[%c0_34, %c0_35] : memref<8x1xf32, #tpu.memory_space<vmem>>, vector<8x1xf32>
      tpu.vector_store %arg7[%c0_34, %c0_35], %36 {strides = array<i32>} : memref<8x1xf32, #tpu.memory_space<vmem>>, vector<8x1xf32>,
    } else {
    }
    %true = arith.constant true
    %20 = arith.xori %17, %true : i1
    %21 = arith.extui %20 : i1 to i32
    %c0_i32_11 = arith.constant 0 : i32
    %22 = arith.cmpi ne, %21, %c0_i32_11 : i32
    scf.if %22 {
      %c0_14 = arith.constant 0 : index
      %c0_15 = arith.constant 0 : index
      %26 = vector.load %arg7[%c0_14, %c0_15] : memref<8x1xf32, #tpu.memory_space<vmem>>, vector<8x1xf32>
      %cst_16 = arith.constant dense<0xFF800000> : vector<8xf32>
      %27 = vector.multi_reduction <maximumf>, %5, %cst_16 [1] : vector<8x16xf32> to vector<8xf32>
      %28 = vector.shape_cast %27 : vector<8xf32> to vector<8x1xf32>
      %29 = arith.maximumf %26, %28 : vector<8x1xf32>
      %30 = vector.broadcast %29 : vector<8x1xf32> to vector<8x16xf32>
      %31 = arith.subf %5, %30 : vector<8x16xf32>
      %32 = math.exp %31 : vector<8x16xf32>
      %c0_17 = arith.constant 0 : index
      %c0_18 = arith.constant 0 : index
      %33 = vector.load %arg8[%c0_17, %c0_18] : memref<8x1xf32, #tpu.memory_space<vmem>>, vector<8x1xf32>
      %34 = arith.subf %26, %29 : vector<8x1xf32>
      %35 = math.exp %34 : vector<8x1xf32>
      %36 = arith.mulf %33, %35 : vector<8x1xf32>
      %cst_19 = arith.constant dense<0.000000e+00> : vector<8xf32>
      %37 = vector.multi_reduction <add>, %32, %cst_19 [1] : vector<8x16xf32> to vector<8xf32>
      %38 = vector.shape_cast %37 : vector<8xf32> to vector<8x1xf32>
      %39 = arith.addf %36, %38 : vector<8x1xf32>
      %c0_20 = arith.constant 0 : index
      %c0_21 = arith.constant 0 : index
      %40 = vector.load %arg8[%c0_20, %c0_21] : memref<8x1xf32, #tpu.memory_space<vmem>>, vector<8x1xf32>
      tpu.vector_store %arg8[%c0_20, %c0_21], %39 {strides = array<i32>} : memref<8x1xf32, #tpu.memory_space<vmem>>, vector<8x1xf32>,
      %c0_22 = arith.constant 0 : index
      %c0_23 = arith.constant 0 : index
      %41 = vector.load %arg9[%c0_22, %c0_23] : memref<8x1xf32, #tpu.memory_space<vmem>>, vector<8x1xf32>
      %cst_24 = arith.constant 0.000000e+00 : f32
      %42 = vector.broadcast %cst_24 : f32 to vector<8x16xf32>
      %43 = arith.select %10, %5, %42 : vector<8x16xi1>, vector<8x16xf32>
      %cst_25 = arith.constant dense<0.000000e+00> : vector<8xf32>
      %44 = vector.multi_reduction <add>, %43, %cst_25 [1] : vector<8x16xf32> to vector<8xf32>
      %45 = vector.shape_cast %44 : vector<8xf32> to vector<8x1xf32>
      %46 = arith.addf %41, %45 : vector<8x1xf32>
      %c0_26 = arith.constant 0 : index
      %c0_27 = arith.constant 0 : index
      %47 = vector.load %arg9[%c0_26, %c0_27] : memref<8x1xf32, #tpu.memory_space<vmem>>, vector<8x1xf32>
      tpu.vector_store %arg9[%c0_26, %c0_27], %46 {strides = array<i32>} : memref<8x1xf32, #tpu.memory_space<vmem>>, vector<8x1xf32>,
      %c0_28 = arith.constant 0 : index
      %c0_29 = arith.constant 0 : index
      %48 = vector.load %arg10[%c0_28, %c0_29] : memref<8x1xf32, #tpu.memory_space<vmem>>, vector<8x1xf32>
      %49 = arith.extui %10 : vector<8x16xi1> to vector<8x16xi32>
      %50 = arith.sitofp %49 : vector<8x16xi32> to vector<8x16xf32>
      %cst_30 = arith.constant dense<0.000000e+00> : vector<8xf32>
      %51 = vector.multi_reduction <add>, %50, %cst_30 [1] : vector<8x16xf32> to vector<8xf32>
      %52 = vector.shape_cast %51 : vector<8xf32> to vector<8x1xf32>
      %53 = arith.addf %48, %52 : vector<8x1xf32>
      %c0_31 = arith.constant 0 : index
      %c0_32 = arith.constant 0 : index
      %54 = vector.load %arg10[%c0_31, %c0_32] : memref<8x1xf32, #tpu.memory_space<vmem>>, vector<8x1xf32>
      tpu.vector_store %arg10[%c0_31, %c0_32], %53 {strides = array<i32>} : memref<8x1xf32, #tpu.memory_space<vmem>>, vector<8x1xf32>,
      %c0_33 = arith.constant 0 : index
      %c0_34 = arith.constant 0 : index
      %55 = vector.load %arg7[%c0_33, %c0_34] : memref<8x1xf32, #tpu.memory_space<vmem>>, vector<8x1xf32>
      tpu.vector_store %arg7[%c0_33, %c0_34], %29 {strides = array<i32>} : memref<8x1xf32, #tpu.memory_space<vmem>>, vector<8x1xf32>,
    } else {
    }
    %c0_i32_12 = arith.constant 0 : i32
    %23 = arith.cmpi eq, %arg1, %c0_i32_12 : i32
    %24 = arith.extui %23 : i1 to i32
    %c0_i32_13 = arith.constant 0 : i32
    %25 = arith.cmpi ne, %24, %c0_i32_13 : i32
    scf.if %25 {
      %c0_14 = arith.constant 0 : index
      %c0_15 = arith.constant 0 : index
      %26 = vector.load %arg7[%c0_14, %c0_15] : memref<8x1xf32, #tpu.memory_space<vmem>>, vector<8x1xf32>
      %c0_16 = arith.constant 0 : index
      %c0_17 = arith.constant 0 : index
      %27 = vector.load %arg8[%c0_16, %c0_17] : memref<8x1xf32, #tpu.memory_space<vmem>>, vector<8x1xf32>
      %28 = math.log %27 : vector<8x1xf32>
      %29 = arith.addf %26, %28 : vector<8x1xf32>
      %c0_18 = arith.constant 0 : index
      %c0_19 = arith.constant 0 : index
      %30 = vector.load %arg10[%c0_18, %c0_19] : memref<8x1xf32, #tpu.memory_space<vmem>>, vector<8x1xf32>
      %cst_20 = arith.constant 9.99999997E-7 : f32
      %31 = vector.broadcast %cst_20 : f32 to vector<8x1xf32>
      %32 = arith.cmpf olt, %30, %31 : vector<8x1xf32>
      %cst_21 = arith.constant 1.000000e+00 : f32
      %33 = vector.broadcast %cst_21 : f32 to vector<8x1xf32>
      %34 = arith.select %32, %33, %30 : vector<8x1xi1>, vector<8x1xf32>
      %c0_22 = arith.constant 0 : index
      %c0_23 = arith.constant 0 : index
      %35 = vector.load %arg9[%c0_22, %c0_23] : memref<8x1xf32, #tpu.memory_space<vmem>>, vector<8x1xf32>
      %36 = arith.mulf %30, %29 : vector<8x1xf32>
      %37 = arith.subf %35, %36 : vector<8x1xf32>
      %38 = tpu.reciprocal %34 {approx = true} : vector<8x1xf32> -> vector<8x1xf32>
      %39 = arith.mulf %37, %38 : vector<8x1xf32>
      %cst_24 = arith.constant -0.285714298 : f32
      %40 = vector.broadcast %cst_24 : f32 to vector<8x1xf32>
      %41 = arith.mulf %40, %39 : vector<8x1xf32>
      %c0_25 = arith.constant 0 : index
      %c0_26 = arith.constant 0 : index
      %42 = vector.load %arg6[%c0_25, %c0_26] : memref<8x1xf32, #tpu.memory_space<vmem>>, vector<8x1xf32>
      tpu.vector_store %arg6[%c0_25, %c0_26], %41 {strides = array<i32>} : memref<8x1xf32, #tpu.memory_space<vmem>>, vector<8x1xf32>,
    } else {
    }
    return
  }
  func.func @transform_0(%arg0: i32, %arg1: i32) -> (i32, i32) {
    %c0_i32 = arith.constant 0 : i32
    %c0_i32_0 = arith.constant 0 : i32
    return %arg0, %c0_i32 : i32, i32
  }
  func.func @transform_1(%arg0: i32, %arg1: i32) -> (i32, i32) {
    %c0_i32 = arith.constant 0 : i32
    %c0_i32_0 = arith.constant 0 : i32
    return %c0_i32, %arg1 : i32, i32
  }
  func.func @transform_2(%arg0: i32, %arg1: i32) -> (i32, i32) {
    %c0_i32 = arith.constant 0 : i32
    %c0_i32_0 = arith.constant 0 : i32
    return %arg0, %c0_i32 : i32, i32
  }
  func.func @transform_3(%arg0: i32, %arg1: i32) -> (i32, i32) {
    %c0_i32 = arith.constant 0 : i32
    %c0_i32_0 = arith.constant 0 : i32
    return %c0_i32, %arg1 : i32, i32
  }
  func.func @transform_4(%arg0: i32, %arg1: i32) -> (i32, i32) {
    %c0_i32 = arith.constant 0 : i32
    %c0_i32_0 = arith.constant 0 : i32
    return %arg0, %c0_i32 : i32, i32
  }
}

</mosaic_0001>

<bundles_post_ra>
// kernel: tpu_custom_call.1
= control target key start
LH: loop header
LB: loop body
LE: loop exit
PB: predicated region body
PF: predicated region fallthrough
CT: control target
= control target key end

     0   :  { %s723_s15 = smov 0   ;;  %s725_s16 = smov 0   ;;  %s841_s0 = inlined_call_operand.vmem [shape: s32[16,1], index: 0, kind: input, shape index: {}]   ;;  %s842_s1 = inlined_call_operand.vmem [shape: s32[1,16], index: 1, kind: input, shape index: {}]   ;;  %s843_s2 = inlined_call_operand.vmem [shape: f32[16,32], index: 2, kind: input, shape index: {}]   ;;  %s844_s3 = inlined_call_operand.vmem [shape: f32[32,16], index: 3, kind: input, shape index: {}]   ;;  %s845_s4 = inlined_call_operand.vmem [shape: f32[16,1], index: 4, kind: output, shape index: {}]  }
   0x1   :  { %s727_s17 = smov 0  }
   0x2 LB: > { %s26_s18 = sadd.s32 1, %s683_s16  ;;  %p583_p0 = scmp.ge.s32.totalorder %s687_s17, 1  ;;  %s687_s17 = sphi %s727_s17, %s14_s17   ;;  %s683_s16 = sphi %s725_s16, %s848_s16   ;;  %s679_s15 = sphi %s723_s15, %s847_s15  }
   0x3   : > { %p28_p1 = scmp.ge.s32.totalorder %s26_s18, 2  ;;  %p199_p2 = scmp.lt.s32.totalorder %s687_s17, 3 }
   0x5   : > { %s850_s18 = smov (%p28_p1, %s26_s18), 0  ;;  %p200_p3 = pnand %p583_p0, %p199_p2 }
   0x6   : > { %v263_v0 = vld [vmem:[%s844_s3] sm:$0xff] (!%p200_p3)  ;;  %v264_v1 = vld [vmem:[%s844_s3 + $0x8] sm:$0xff] (!%p200_p3)  ;;  %v265_v2 = vld [vmem:[%s844_s3 + $0x10] sm:$0xff] (!%p200_p3)  ;;  %vm257_vm0 = vcmask (!%p200_p3), 7168   ;;  %v689_v3 = vmov (!%p200_p3), 0.0|0.0   ;;  %v690_v6 = vmov (!%p200_p3), -inf  }
   0x7   : > { %203 = sbr.rel (%p200_p3) target bundleno = 1136 (0x470), region = 36  ;;  %611 = vmatprep.subr.bf16.mxu0 (!%p200_p3), %v689_v3  ;;  %v612_v4 = vpack.c.bf16 (!%p200_p3), %v264_v1, %v263_v0  ;;  %v266_v5 = vld [vmem:[%s844_s3 + $0x18] sm:$0xff] (!%p200_p3)  ;;  %258 = vst.msk [vmem:[#allocation2] sm:$0xff] (!%p200_p3), %vm257_vm0, %v690_v6  ;;  %p234_p4 = scmp.lt.s32.totalorder (!%p200_p3), %s679_s15, 1  ;;  %v691_v7 = vmov (!%p200_p3), 0.0   ;;  %vm692_vm1 = vmmov (!%p200_p3), 0  }
   0x8   : > { %259 = vst.msk [vmem:[#allocation3] sm:$0xff] (!%p200_p3), %vm257_vm0, %v691_v7  ;;  %260 = vst.msk [vmem:[#allocation4] sm:$0xff] (!%p200_p3), %vm257_vm0, %v691_v7  ;;  %608 = vmatprep.mubr.msk.f32.mxu0 (!%p200_p3), %vm692_vm1, %v691_v7  ;;  %v615_v8 = vpack.c.bf16 (!%p200_p3), %v266_v5, %v265_v2  ;;  %v693_v9 = vmov (!%p200_p3), 0   ;;  %vm267_vm2 = vcmask (!%p200_p3), 261120   ;;  %s589_s12 = sshll.u32 (!%p200_p3), %s679_s15, 3 }
   0x9   : > { %261 = vst.msk [vmem:[#allocation5] sm:$0xff] (!%p200_p3), %vm257_vm0, %v691_v7  ;;  %613 = vmatpush3.bf16.msra.mxu0 (!%p200_p3), %v612_v4  ;;  %650 = vset.pattern.permute.xlu0 (!%p200_p3), %v693_v9  ;;  %s355_s13 = sadd.s32 (!%p200_p3), 8, %s589_s12  ;;  %p354_p5 = scmp.lt.s32.totalorder (!%p200_p3), %s589_s12, 16  ;;  %v783_v12 = vld [vmem:[%s842_s1] ss:$0 sm:$0xff] (!%p200_p3) }
   0xa   : > { %614 = vmatprep.subr.bf16.mxu0 (!%p200_p3), %v689_v3  ;;  %p590_p6 = scmp.gt.s32.totalorder (!%p200_p3), %s355_s13, 0 }
   0xc   : > { %p776_p7 = pnand (!%p200_p3), %p590_p6, %p354_p5 }
   0xd   : > { %616 = vmatpush3.bf16.msra.mxu0 (!%p200_p3), %v615_v8 }
   0xe   : > { %s235_s27 = scalar_select %p234_p4, %s679_s15, 1 }
   0xf   : > { %vm371_vm4 = vcmask (!%p776_p7), 130048   ;;  %v694_v17 = vmov (!%p776_p7), 0   ;;  %v370_v18 = vld [vmem:[#allocation2] sm:$0xff] (!%p776_p7)  ;;  %v361_v22 = vlaneseq (!%p776_p7)  ;;  %v363_v23 = vstv (!%p776_p7), %s589_s12  ;;  %v397_v38 = vld [vmem:[#allocation4] sm:$0xff] (!%p776_p7)  ;;  %v386_v43 = vld [vmem:[#allocation3] sm:$0xff] (!%p776_p7) }
  0x10   : > { %s761_s28 = sshll.u32 %s235_s27, 3  ;;  %v695_v34 = vmov (!%p776_p7), 0.0   ;;  %v404_v47 = vld [vmem:[#allocation5] sm:$0xff] (!%p776_p7) }
  0x11   : > { %s244_s5 = scalar_lea.vmem %s843_s2, %s761_s28  ;;  %s252_s8 = scalar_lea.vmem %s845_s4, %s761_s28  ;;  %v362_v24 = vshrl.u32 (!%p776_p7), %v361_v22, 7  ;;  %v366_v25 = vand.u32 (!%p776_p7), 127, %v361_v22 }
  0x12   : > { %v262_v10 = vld [vmem:[%s244_s5] sm:$0xff]  ;;  %s237_s11 = scalar_lea.vmem %s841_s0, %s761_s28 }
  0x13   : > { %v341_v11 = vld [vmem:[%s237_s11] sm:$0xff]  ;;  %609 = vmatmul.mubr.msk.f32.vlgmr.msra.gmra.mrb[0].mxu0 %vm267_vm2, %v262_v10  ;;  %v364_v26 = vadd.s32 (!%p776_p7), %v363_v23, %v362_v24 }
  0x14   : > { %344 = vperm.xlu0 %650, %v341_v11  }
  0x15   : > { %vm369_vm5 = vcmp.ne.s32.totalorder (!%p776_p7), %v364_v26, %v366_v25 }
  0x18   : > { %651 = vset.pattern.permute.xlu0 (!%p776_p7), %v694_v17 }
  0x93   : > { %v785_v13 = vpop.permute.xlu0 %344 }
  0x94   : > { %vm350_vm3 = vcmp.eq.s32.totalorder %v785_v13, %v783_v12 }
  0x95   : > { %vm385_vm6 = vmand (!%p776_p7), %vm350_vm3, %vm369_vm5 }
  0x96   : > { %v591_v35 = vsel (!%p776_p7), %vm385_vm6, 1.0, %v695_v34 }
  0x97   : > { %v407_v37 = vsel (!%p776_p7), %vm371_vm4, %v591_v35, 0.0 }
  0xe1   : > { %360 = sbr.rel (%p776_p7) target bundleno = 670 (0x29e), region = 44 }
  0xe6   : > { %v789_v14 = vpop.f32.mrb[0].mxu0 }
  0xe7   : > { %v610_v15 = vpop.f32.mrb[1].mxu0  ;;  %v372_v16 = vsel (!%p776_p7), %vm371_vm4, %v789_v14, -inf  ;;  %v398_v27 = vsel (!%p776_p7), %vm385_vm6, %v789_v14, 0.0 }
  0xe8   : > { %373 = vmax.xlane.f32.xlu0 %v372_v16  ;;  %v399_v28 = vsel %vm371_vm4, %v398_v27, 0.0 }
  0xe9   : > { %400 = vadd.xlane.f32.xlu1 %v399_v28 }
 0x175   : > { %v374_v19 = vpop.xlane.xlu0 %373 }
 0x176   : > { %v375_v20 = vmax.f32 %v370_v18, %v374_v19  ;;  %v401_v39 = vpop.xlane.xlu1 %400 }
 0x177   : > { %v402_v40 = vadd.f32 %v401_v39, %v397_v38 }
 0x178   : > { %v387_v21 = vsub.f32 %v370_v18, %v375_v20  ;;  %412 = vst.msk [vmem:[#allocation2] sm:$0xff] %vm257_vm0, %v375_v20  ;;  %378 = vperm.xlu0 %651, %v375_v20  }
 0x179   : > { %403 = vst.msk [vmem:[#allocation4] sm:$0xff] %vm257_vm0, %v402_v40 }
 0x17a   : > { %v388_v41 = vmul.f32 1.442695, %v387_v21 }
 0x1f7   : > { %v379_v29 = vpop.permute.xlu0 %378 }
 0x1f8   : > { %v381_v30 = vsub.f32 %v789_v14, %v379_v29 }
 0x1fa   : > { %v382_v31 = vmul.f32 1.442695, %v381_v30 }
 0x1fc   : > { %652 = vpow2.f32 %v382_v31 }
 0x1fd   : > { %654 = vpow2.f32 %v388_v41 }
 0x206   : > { %v653_v32 = vpop.eup %652 }
 0x207   : > { %v384_v33 = vsel %vm369_vm5, %v653_v32, 0.0  ;;  %v655_v42 = vpop.eup %654 }
 0x208   : > { %v391_v36 = vsel %vm371_vm4, %v384_v33, 0.0  ;;  %v390_v44 = vmul.f32 %v655_v42, %v386_v43 }
 0x209   : > { %392 = vadd.xlane.f32.xlu1 %v391_v36 }
 0x20d   : > { %408 = vadd.xlane.f32.xlu1 %v407_v37 }
 0x296   : > { %v393_v45 = vpop.xlane.xlu1 %392 }
 0x297   : > { %v394_v46 = vadd.f32 %v393_v45, %v390_v44 }
 0x299   : > { %396 = vst.msk [vmem:[#allocation3] sm:$0xff] %vm257_vm0, %v394_v46 }
 0x29a   : > { %v409_v48 = vpop.xlane.xlu1 %408 }
 0x29b   : > { %v410_v49 = vadd.f32 %v409_v48, %v404_v47 }
 0x29d   : > { %411 = vst.msk [vmem:[#allocation5] sm:$0xff] %vm257_vm0, %v410_v49 }
 0x29e PF: > { %415 = sbr.rel (!%p776_p7) target bundleno = 1109 (0x455), region = 48  ;;  %vm417_vm7 = vcmask (%p776_p7), 130048   ;;  %v696_v51 = vmov (%p776_p7), 0   ;;  %v416_v52 = vld [vmem:[#allocation2] sm:$0xff] (%p776_p7)  ;;  %v442_v56 = vsel (%p776_p7), %vm350_vm3, %v789_v14, 0.0  ;;  %v697_v62 = vmov (%p776_p7), 0.0  }
 0x29f   : > { %v418_v50 = vsel (%p776_p7), %vm417_vm7, %v789_v14, -inf  ;;  %656 = vset.pattern.permute.xlu0 (%p776_p7), %v696_v51  ;;  %v443_v57 = vsel (%p776_p7), %vm417_vm7, %v442_v56, 0.0  ;;  %v592_v63 = vsel (%p776_p7), %vm350_vm3, 1.0, %v697_v62  ;;  %v441_v2 = vld [vmem:[#allocation4] sm:$0xff] (%p776_p7) }
 0x2a0   : > { %419 = vmax.xlane.f32.xlu0 (%p776_p7), %v418_v50  ;;  %444 = vadd.xlane.f32.xlu1 (%p776_p7), %v443_v57  ;;  %v451_v1 = vsel (%p776_p7), %vm417_vm7, %v592_v63, 0.0  ;;  %v430_v7 = vld [vmem:[#allocation3] sm:$0xff] (%p776_p7) }
 0x2a4   : > { %v448_v11 = vld [vmem:[#allocation5] sm:$0xff] (%p776_p7) }
 0x32d   : > { %v420_v53 = vpop.xlane.xlu0 %419  ;;  %v445_v3 = vpop.xlane.xlu1 %444 }
 0x32e   : > { %v421_v54 = vmax.f32 %v416_v52, %v420_v53  ;;  %v446_v4 = vadd.f32 %v445_v3, %v441_v2 }
 0x330   : > { %v431_v55 = vsub.f32 %v416_v52, %v421_v54  ;;  %456 = vst.msk [vmem:[#allocation2] sm:$0xff] %vm257_vm0, %v421_v54  ;;  %424 = vperm.xlu0 %656, %v421_v54   ;;  %447 = vst.msk [vmem:[#allocation4] sm:$0xff] %vm257_vm0, %v446_v4 }
 0x332   : > { %v432_v5 = vmul.f32 1.442695, %v431_v55 }
 0x3af   : > { %v425_v58 = vpop.permute.xlu0 %424 }
 0x3b0   : > { %v427_v59 = vsub.f32 %v789_v14, %v425_v58 }
 0x3b2   : > { %v428_v60 = vmul.f32 1.442695, %v427_v59 }
 0x3b4   : > { %657 = vpow2.f32 %v428_v60 }
 0x3b5   : > { %659 = vpow2.f32 %v432_v5 }
 0x3be   : > { %v658_v61 = vpop.eup %657 }
 0x3bf   : > { %v435_v0 = vsel %vm417_vm7, %v658_v61, 0.0  ;;  %v660_v6 = vpop.eup %659 }
 0x3c0   : > { %436 = vadd.xlane.f32.xlu1 %v435_v0  ;;  %v434_v8 = vmul.f32 %v660_v6, %v430_v7 }
 0x3c4   : > { %452 = vadd.xlane.f32.xlu1 %v451_v1 }
 0x44d   : > { %v437_v9 = vpop.xlane.xlu1 %436 }
 0x44e   : > { %v438_v10 = vadd.f32 %v437_v9, %v434_v8 }
 0x450   : > { %440 = vst.msk [vmem:[#allocation3] sm:$0xff] %vm257_vm0, %v438_v10 }
 0x451   : > { %v453_v12 = vpop.xlane.xlu1 %452 }
 0x452   : > { %v454_v13 = vadd.f32 %v453_v12, %v448_v11 }
 0x454   : > { %455 = vst.msk [vmem:[#allocation5] sm:$0xff] %vm257_vm0, %v454_v13 }
 0x455 PF: > { %v460_v18 = vld [vmem:[#allocation2] sm:$0xff]  ;;  %v468_v21 = vld [vmem:[#allocation4] sm:$0xff] }
 0x457   : > { %v461_v14 = vld [vmem:[#allocation3] sm:$0xff] }
 0x458   : > { %661 = vlog2.f32 %v461_v14 }
 0x45b   : > { %v465_v15 = vld [vmem:[#allocation5] sm:$0xff] }
 0x45c   : > { %vm466_vm8 = vcmp.lt.f32.partialorder %v465_v15, 1e-06 }
 0x45d   : > { %v467_v16 = vsel %vm466_vm8, 1.0, %v465_v15 }
 0x45e   : > { %663 = vrcp.f32 %v467_v16 }
 0x462   : > { %v662_v17 = vpop.eup %661 }
 0x463   : > { %v463_v19 = vmul.f32 0.6931472, %v662_v17 }
 0x465   : > { %v464_v20 = vadd.f32 %v463_v19, %v460_v18 }
 0x467   : > { %v469_v22 = vmul.f32 %v465_v15, %v464_v20 }
 0x468   : > { %v664_v23 = vpop.eup %663 }
 0x469   : > { %v470_v24 = vsub.f32 %v468_v21, %v469_v22 }
 0x46b   : > { %v472_v25 = vmul.f32 %v664_v23, %v470_v24 }
 0x46d   : > { %v473_v26 = vmul.f32 -0.2857143, %v472_v25 }
 0x46f   : > { %475 = vst.msk [vmem:[%s252_s8] sm:$0xff] %vm257_vm0, %v473_v26 }
 0x470 PF: > { %s14_s17 = sadd.s32 1, %s687_s17   ;;  %s847_s15 = smov %s683_s16 }
 0x471   : > { %p11_p8 = scmp.ge.s32.totalorder %s14_s17, 4   ;;  %s848_s16 = smov %s850_s18 }
 0x473   :  { %13 = sbr.rel (!%p11_p8) target bundleno = 2 (0x2), region = 91 }

</bundles_post_ra>
